<compile_context>
chip_gen: v5e
topology: v5e:2x2
jax: 0.10.0
libtpu: 0.0.40
codegen_flags: <defaults>
</compile_context>

<pallas_src>
import math

import jax
import jax.numpy as jnp
from jax.experimental import pallas as pl
from jax.experimental.pallas import tpu as pltpu


# --------------------------------------------------------------------------
# model dims (small, consistent with the module's constructor arguments)
# --------------------------------------------------------------------------
B = 2          # batch
S = 8          # sequence length
D_MODEL = 32
D_K = 8
D_V = 8
N_HEADS = 4
D_FF = 64
LN_EPS = 1e-5  # PyTorch nn.LayerNorm default


def _layer_norm(x, gamma, beta):
    mu = jnp.mean(x, axis=-1, keepdims=True)
    var = jnp.mean((x - mu) ** 2, axis=-1, keepdims=True)   # biased (PyTorch LN)
    return (x - mu) * jax.lax.rsqrt(var + LN_EPS) * gamma + beta


def encoder_layer_kernel(
    # inputs (whole batch resident in VMEM, nothing replicated)
    x_ref, mask_ref, wqkv_ref, wo_ref, w1_ref, w2_ref, vec_ref,
    # outputs
    out_ref, attn_ref,
):
    bsz, seq, dm = x_ref.shape
    n_heads = attn_ref.shape[1]
    qkv_w = wqkv_ref.shape[1]                 # 2*H*Dk + H*Dv
    hdv = wo_ref.shape[0]                     # H*Dv
    hdk = (qkv_w - hdv) // 2                  # H*Dk
    dk = hdk // n_heads
    dv = hdv // n_heads
    dff = w1_ref.shape[1]
    bs = bsz * seq

    # ---- packed bias / LayerNorm vectors: one (8,128) slab, one DMA ----
    bqkv = vec_ref[0:1, :qkv_w]               # (1, 3*H*Dk)  (q part pre-scaled)
    b1   = vec_ref[1:2, :dff]
    bo   = vec_ref[2:3, :dm]
    g1   = vec_ref[3:4, :dm]
    be1  = vec_ref[4:5, :dm]
    b2   = vec_ref[5:6, :dm]
    g2   = vec_ref[6:7, :dm]
    be2  = vec_ref[7:8, :dm]

    x2d = x_ref[...].reshape(bs, dm)          # (B*S, D) f32, leading-dim flatten (free)
    xb = x2d.astype(jnp.bfloat16)

    # ---- fused Q|K|V projection: one MXU pass (1/sqrt(dk) folded into wq, bq) ----
    qkv = jnp.dot(xb, wqkv_ref[...], preferred_element_type=jnp.float32) + bqkv   # (B*S, 3*H*Dk)

    masked = mask_ref[...] != 0               # (B, S, S) bool, compact mask
    neg = jnp.float32(-1e9)

    # ---- per-head scores (heads live in lanes after the fused projection) ----
    scores_h = []
    for h in range(n_heads):
        qh = qkv[:, h * dk:(h + 1) * dk].reshape(bsz, seq, dk).astype(jnp.bfloat16)
        kh = qkv[:, hdk + h * dk: hdk + (h + 1) * dk].reshape(bsz, seq, dk).astype(jnp.bfloat16)
        s = jnp.einsum('bqd,bkd->bqk', qh, kh, preferred_element_type=jnp.float32)
        scores_h.append(jnp.where(masked, neg, s))   # exact masked_fill(-1e9) semantics
    scores = jnp.stack(scores_h, axis=1)              # (B, H, S, S)

    # softmax in f32; approx reciprocal -> EUP slot, rel err ~1e-3 (documented).
    m = jnp.max(scores, axis=-1, keepdims=True)
    e = jnp.exp(scores - m)
    attn = e * pl.reciprocal(jnp.sum(e, axis=-1, keepdims=True), approx=True)
    attn_ref[...] = attn                               # single store

    # ---- per-head context, assembled as (B*S, H*Dv); single output projection ----
    ctx_h = []
    for h in range(n_heads):
        vh = qkv[:, 2 * hdk + h * dv: 2 * hdk + (h + 1) * dv]
        vh = vh.reshape(bsz, seq, dv).astype(jnp.bfloat16)
        ah = attn[:, h].astype(jnp.bfloat16)
        c = jnp.einsum('bqk,bkd->bqd', ah, vh, preferred_element_type=jnp.float32)  # (B,S,Dv)
        ctx_h.append(c.reshape(bs, dv))
    ctx2d = jnp.concatenate(ctx_h, axis=-1)            # (B*S, H*Dv)

    attn_out = jnp.dot(ctx2d.astype(jnp.bfloat16), wo_ref[...],
                       preferred_element_type=jnp.float32) + bo                    # (B*S, D)

    y = _layer_norm(attn_out + x2d, g1, be1)           # residual + LN1 (f32)

    # ---- position-wise feed forward (Conv1d k=1 == Linear), two 2D matmuls ----
    h1 = jnp.maximum(jnp.dot(y.astype(jnp.bfloat16), w1_ref[...],
                             preferred_element_type=jnp.float32) + b1, 0.0)        # ReLU
    h2 = jnp.dot(h1.astype(jnp.bfloat16), w2_ref[...],
                 preferred_element_type=jnp.float32) + b2

    out2d = _layer_norm(h2 + y, g2, be2)               # residual + LN2
    out_ref[...] = out2d.reshape(bsz, seq, dm).astype(out_ref.dtype)   # single store


def encoder_layer(x, mask, params):
    """x: (B, S, D) f32, mask: (B, S, S) int (nonzero == masked).
    Returns (enc_outputs (B,S,D), attn (B,H,S,S))."""
    Bsz, Seq, Dm = x.shape
    H, Dk, Dv, Dff = N_HEADS, D_K, D_V, D_FF
    scale = jnp.float32(1.0 / math.sqrt(Dk))

    # fused QKV weight, with the 1/sqrt(dk) score scale folded into wq (and bq below).
    wqkv = jnp.concatenate([params["wq"] * scale, params["wk"], params["wv"]],
                           axis=1).astype(jnp.bfloat16)                 # (D, 3*H*Dk)
    wo = params["wo"].astype(jnp.bfloat16)                              # (H*Dv, D)
    w1 = params["w1"].astype(jnp.bfloat16)                              # (D, Dff)
    w2 = params["w2"].astype(jnp.bfloat16)                              # (Dff, D)

    # pack every small bias / LayerNorm vector into one (8,128) f32 slab (one DMA).
    # (In a real model this packing would be done once at parameter-init time.)
    bqkv = jnp.concatenate([params["bq"][0] * scale, params["bk"][0], params["bv"][0]])
    vec = jnp.zeros((8, 128), jnp.float32)
    vec = vec.at[0, :3 * H * Dk].set(bqkv)
    vec = vec.at[1, :Dff].set(params["b1"][0])
    vec = vec.at[2, :Dm].set(params["bo"][0])
    vec = vec.at[3, :Dm].set(params["ln1_g"][0])
    vec = vec.at[4, :Dm].set(params["ln1_b"][0])
    vec = vec.at[5, :Dm].set(params["b2"][0])
    vec = vec.at[6, :Dm].set(params["ln2_g"][0])
    vec = vec.at[7, :Dm].set(params["ln2_b"][0])

    inputs = (x, mask.astype(jnp.int32), wqkv, wo, w1, w2, vec)

    vmem = pl.BlockSpec(memory_space=pltpu.MemorySpace.VMEM)
    out, attn = pl.pallas_call(
        encoder_layer_kernel,
        out_shape=(jax.ShapeDtypeStruct((Bsz, Seq, Dm), jnp.float32),
                   jax.ShapeDtypeStruct((Bsz, H, Seq, Seq), jnp.float32)),
        in_specs=[vmem] * len(inputs),
        out_specs=(vmem, vmem),
    )(*inputs)
    return out, attn


def init_params(key):
    """Synthetic params. Linear weights stored pre-transposed as (in, out); the
    Conv1d(k=1) FF weights likewise squeeze the kernel dim and transpose to (in, out)."""
    ks = jax.random.split(key, 8)
    s = 0.02
    return {
        "wq": jax.random.normal(ks[0], (D_MODEL, N_HEADS * D_K), jnp.float32) * s,
        "bq": jnp.zeros((1, N_HEADS * D_K), jnp.float32),
        "wk": jax.random.normal(ks[1], (D_MODEL, N_HEADS * D_K), jnp.float32) * s,
        "bk": jnp.zeros((1, N_HEADS * D_K), jnp.float32),
        "wv": jax.random.normal(ks[2], (D_MODEL, N_HEADS * D_V), jnp.float32) * s,
        "bv": jnp.zeros((1, N_HEADS * D_V), jnp.float32),
        "wo": jax.random.normal(ks[3], (N_HEADS * D_V, D_MODEL), jnp.float32) * s,
        "bo": jnp.zeros((1, D_MODEL), jnp.float32),
        "ln1_g": jnp.ones((1, D_MODEL), jnp.float32),
        "ln1_b": jnp.zeros((1, D_MODEL), jnp.float32),
        "w1": jax.random.normal(ks[4], (D_MODEL, D_FF), jnp.float32) * s,
        "b1": jnp.zeros((1, D_FF), jnp.float32),
        "w2": jax.random.normal(ks[5], (D_FF, D_MODEL), jnp.float32) * s,
        "b2": jnp.zeros((1, D_MODEL), jnp.float32),
        "ln2_g": jnp.ones((1, D_MODEL), jnp.float32),
        "ln2_b": jnp.zeros((1, D_MODEL), jnp.float32),
    }


def encoder_layer_ref(x, mask, p):
    """Pure-JAX reference mirroring the PyTorch module (masked_fill + softmax, all f32)."""
    Bsz, Seq, Dm = x.shape

    def proj(w, b, dh):
        y = jnp.einsum('bsd,de->bse', x, w) + b[0]
        return y.reshape(Bsz, Seq, N_HEADS, dh).transpose(0, 2, 1, 3)

    q = proj(p["wq"], p["bq"], D_K)
    k = proj(p["wk"], p["bk"], D_K)
    v = proj(p["wv"], p["bv"], D_V)
    scores = jnp.einsum('bhqd,bhkd->bhqk', q, k) / math.sqrt(D_K)
    scores = jnp.where((mask != 0)[:, None], jnp.float32(-1e9), scores)
    attn = jax.nn.softmax(scores, axis=-1)
    ctx = jnp.einsum('bhqk,bhkd->bhqd', attn, v)
    ctx = ctx.transpose(0, 2, 1, 3).reshape(Bsz, Seq, N_HEADS * D_V)
    ao = jnp.einsum('bsd,dm->bsm', ctx, p["wo"]) + p["bo"][0]
    y = _layer_norm(ao + x, p["ln1_g"], p["ln1_b"])
    h1 = jnp.maximum(jnp.einsum('bsd,df->bsf', y, p["w1"]) + p["b1"][0], 0.0)
    h2 = jnp.einsum('bsf,fd->bsd', h1, p["w2"]) + p["b2"][0]
    out = _layer_norm(h2 + y, p["ln2_g"], p["ln2_b"])
    return out, attn


if __name__ == "__main__":
    key = jax.random.PRNGKey(0)
    k_in, k_par = jax.random.split(key)

    enc_inputs = jax.random.normal(k_in, (B, S, D_MODEL), jnp.float32)

    # padding-style self-attention mask: batch 0 unmasked; batch 1 masks the
    # last two key positions for every query position (nonzero == masked).
    mask = jnp.zeros((B, S, S), jnp.int32)
    mask = mask.at[1, :, S - 2:].set(1)

    params = init_params(k_par)

    enc_outputs, attn = encoder_layer(enc_inputs, mask, params)
    jax.block_until_ready((enc_outputs, attn))

    assert enc_outputs.shape == (B, S, D_MODEL)
    assert attn.shape == (B, N_HEADS, S, S)
    assert bool(jnp.all(jnp.isfinite(enc_outputs)))
    assert bool(jnp.all(jnp.isfinite(attn)))

    ref_out, ref_attn = encoder_layer_ref(enc_inputs, mask, params)
    assert bool(jnp.allclose(enc_outputs, ref_out, atol=2e-2, rtol=2e-2))
    assert bool(jnp.allclose(attn, ref_attn, atol=2e-2, rtol=2e-2))

    print("KERNEL_OK")
</pallas_src>

<mosaic_0001>
module attributes {stable_mosaic.version = 11 : i64} {
  func.func @encoder_layer_kernel(%arg0: memref<2x8x32xf32, #tpu.memory_space<vmem>>, %arg1: memref<2x8x8xi32, #tpu.memory_space<vmem>>, %arg2: memref<32x96xbf16, #tpu.memory_space<vmem>>, %arg3: memref<32x32xbf16, #tpu.memory_space<vmem>>, %arg4: memref<32x64xbf16, #tpu.memory_space<vmem>>, %arg5: memref<64x32xbf16, #tpu.memory_space<vmem>>, %arg6: memref<8x128xf32, #tpu.memory_space<vmem>>, %arg7: memref<2x8x32xf32, #tpu.memory_space<vmem>>, %arg8: memref<2x4x8x8xf32, #tpu.memory_space<vmem>>) attributes {dimension_semantics = [], scalar_prefetch = 0 : i64, scratch_operands = 0 : i64, tpu.core_type = #tpu.core_type<tc>} {
    %c0 = arith.constant 0 : index
    %c0_0 = arith.constant 0 : index
    %0 = vector.load %arg6[%c0, %c0_0] : memref<8x128xf32, #tpu.memory_space<vmem>>, vector<1x96xf32>
    %c1 = arith.constant 1 : index
    %c0_1 = arith.constant 0 : index
    %1 = vector.load %arg6[%c1, %c0_1] : memref<8x128xf32, #tpu.memory_space<vmem>>, vector<1x64xf32>
    %c2 = arith.constant 2 : index
    %c0_2 = arith.constant 0 : index
    %2 = vector.load %arg6[%c2, %c0_2] : memref<8x128xf32, #tpu.memory_space<vmem>>, vector<1x32xf32>
    %c3 = arith.constant 3 : index
    %c0_3 = arith.constant 0 : index
    %3 = vector.load %arg6[%c3, %c0_3] : memref<8x128xf32, #tpu.memory_space<vmem>>, vector<1x32xf32>
    %c4 = arith.constant 4 : index
    %c0_4 = arith.constant 0 : index
    %4 = vector.load %arg6[%c4, %c0_4] : memref<8x128xf32, #tpu.memory_space<vmem>>, vector<1x32xf32>
    %c5 = arith.constant 5 : index
    %c0_5 = arith.constant 0 : index
    %5 = vector.load %arg6[%c5, %c0_5] : memref<8x128xf32, #tpu.memory_space<vmem>>, vector<1x32xf32>
    %c6 = arith.constant 6 : index
    %c0_6 = arith.constant 0 : index
    %6 = vector.load %arg6[%c6, %c0_6] : memref<8x128xf32, #tpu.memory_space<vmem>>, vector<1x32xf32>
    %c7 = arith.constant 7 : index
    %c0_7 = arith.constant 0 : index
    %7 = vector.load %arg6[%c7, %c0_7] : memref<8x128xf32, #tpu.memory_space<vmem>>, vector<1x32xf32>
    %c0_8 = arith.constant 0 : index
    %c0_9 = arith.constant 0 : index
    %c0_10 = arith.constant 0 : index
    %8 = vector.load %arg0[%c0_8, %c0_9, %c0_10] : memref<2x8x32xf32, #tpu.memory_space<vmem>>, vector<2x8x32xf32>
    %9 = vector.shape_cast %8 : vector<2x8x32xf32> to vector<16x32xf32>
    %10 = arith.truncf %9 : vector<16x32xf32> to vector<16x32xbf16>
    %c0_11 = arith.constant 0 : index
    %c0_12 = arith.constant 0 : index
    %11 = vector.load %arg2[%c0_11, %c0_12] : memref<32x96xbf16, #tpu.memory_space<vmem>>, vector<32x96xbf16>
    %cst = arith.constant dense<0.000000e+00> : vector<16x96xf32>
    %12 = tpu.matmul %10, %11, %cst {dimension_numbers = #tpu.dot_dimension_numbers<[1], [0], [0], [1], [0, 0, 1, 1], [], []>} : vector<16x32xbf16>, vector<32x96xbf16>, vector<16x96xf32> -> vector<16x96xf32>
    %13 = vector.broadcast %0 : vector<1x96xf32> to vector<16x96xf32>
    %14 = arith.addf %12, %13 : vector<16x96xf32>
    %c0_13 = arith.constant 0 : index
    %c0_14 = arith.constant 0 : index
    %c0_15 = arith.constant 0 : index
    %15 = vector.load %arg1[%c0_13, %c0_14, %c0_15] : memref<2x8x8xi32, #tpu.memory_space<vmem>>, vector<2x8x8xi32>
    %c0_i32 = arith.constant 0 : i32
    %16 = vector.broadcast %c0_i32 : i32 to vector<2x8x8xi32>
    %17 = arith.cmpi ne, %15, %16 : vector<2x8x8xi32>
    %18 = vector.extract_strided_slice %14 {offsets = [0, 0], sizes = [16, 8], strides = [1, 1]} : vector<16x96xf32> to vector<16x8xf32>
    %19 = vector.shape_cast %18 : vector<16x8xf32> to vector<2x8x8xf32>
    %20 = arith.truncf %19 : vector<2x8x8xf32> to vector<2x8x8xbf16>
    %21 = vector.extract_strided_slice %14 {offsets = [0, 32], sizes = [16, 8], strides = [1, 1]} : vector<16x96xf32> to vector<16x8xf32>
    %22 = vector.shape_cast %21 : vector<16x8xf32> to vector<2x8x8xf32>
    %23 = arith.truncf %22 : vector<2x8x8xf32> to vector<2x8x8xbf16>
    "tpu.trace_start"() <{level = 10 : i32, message = "bqd,bkd->bqk"}> : () -> ()
    %cst_16 = arith.constant dense<0.000000e+00> : vector<2x8x8xf32>
    %24 = tpu.matmul %20, %23, %cst_16 {dimension_numbers = #tpu.dot_dimension_numbers<[2], [2], [1], [1], [0, 0, 0, 1, 1, 1], [0], [0]>} : vector<2x8x8xbf16>, vector<2x8x8xbf16>, vector<2x8x8xf32> -> vector<2x8x8xf32>
    %cst_17 = arith.constant -1.000000e+09 : f32
    "tpu.trace_stop"() : () -> ()
    %25 = vector.broadcast %cst_17 : f32 to vector<2x8x8xf32>
    %26 = arith.select %17, %25, %24 : vector<2x8x8xi1>, vector<2x8x8xf32>
    %27 = vector.extract_strided_slice %14 {offsets = [0, 8], sizes = [16, 8], strides = [1, 1]} : vector<16x96xf32> to vector<16x8xf32>
    %28 = vector.shape_cast %27 : vector<16x8xf32> to vector<2x8x8xf32>
    %29 = arith.truncf %28 : vector<2x8x8xf32> to vector<2x8x8xbf16>
    %30 = vector.extract_strided_slice %14 {offsets = [0, 40], sizes = [16, 8], strides = [1, 1]} : vector<16x96xf32> to vector<16x8xf32>
    %31 = vector.shape_cast %30 : vector<16x8xf32> to vector<2x8x8xf32>
    %32 = arith.truncf %31 : vector<2x8x8xf32> to vector<2x8x8xbf16>
    "tpu.trace_start"() <{level = 10 : i32, message = "bqd,bkd->bqk"}> : () -> ()
    %cst_18 = arith.constant dense<0.000000e+00> : vector<2x8x8xf32>
    %33 = tpu.matmul %29, %32, %cst_18 {dimension_numbers = #tpu.dot_dimension_numbers<[2], [2], [1], [1], [0, 0, 0, 1, 1, 1], [0], [0]>} : vector<2x8x8xbf16>, vector<2x8x8xbf16>, vector<2x8x8xf32> -> vector<2x8x8xf32>
    %cst_19 = arith.constant -1.000000e+09 : f32
    "tpu.trace_stop"() : () -> ()
    %34 = vector.broadcast %cst_19 : f32 to vector<2x8x8xf32>
    %35 = arith.select %17, %34, %33 : vector<2x8x8xi1>, vector<2x8x8xf32>
    %36 = vector.extract_strided_slice %14 {offsets = [0, 16], sizes = [16, 8], strides = [1, 1]} : vector<16x96xf32> to vector<16x8xf32>
    %37 = vector.shape_cast %36 : vector<16x8xf32> to vector<2x8x8xf32>
    %38 = arith.truncf %37 : vector<2x8x8xf32> to vector<2x8x8xbf16>
    %39 = vector.extract_strided_slice %14 {offsets = [0, 48], sizes = [16, 8], strides = [1, 1]} : vector<16x96xf32> to vector<16x8xf32>
    %40 = vector.shape_cast %39 : vector<16x8xf32> to vector<2x8x8xf32>
    %41 = arith.truncf %40 : vector<2x8x8xf32> to vector<2x8x8xbf16>
    "tpu.trace_start"() <{level = 10 : i32, message = "bqd,bkd->bqk"}> : () -> ()
    %cst_20 = arith.constant dense<0.000000e+00> : vector<2x8x8xf32>
    %42 = tpu.matmul %38, %41, %cst_20 {dimension_numbers = #tpu.dot_dimension_numbers<[2], [2], [1], [1], [0, 0, 0, 1, 1, 1], [0], [0]>} : vector<2x8x8xbf16>, vector<2x8x8xbf16>, vector<2x8x8xf32> -> vector<2x8x8xf32>
    %cst_21 = arith.constant -1.000000e+09 : f32
    "tpu.trace_stop"() : () -> ()
    %43 = vector.broadcast %cst_21 : f32 to vector<2x8x8xf32>
    %44 = arith.select %17, %43, %42 : vector<2x8x8xi1>, vector<2x8x8xf32>
    %45 = vector.extract_strided_slice %14 {offsets = [0, 24], sizes = [16, 8], strides = [1, 1]} : vector<16x96xf32> to vector<16x8xf32>
    %46 = vector.shape_cast %45 : vector<16x8xf32> to vector<2x8x8xf32>
    %47 = arith.truncf %46 : vector<2x8x8xf32> to vector<2x8x8xbf16>
    %48 = vector.extract_strided_slice %14 {offsets = [0, 56], sizes = [16, 8], strides = [1, 1]} : vector<16x96xf32> to vector<16x8xf32>
    %49 = vector.shape_cast %48 : vector<16x8xf32> to vector<2x8x8xf32>
    %50 = arith.truncf %49 : vector<2x8x8xf32> to vector<2x8x8xbf16>
    "tpu.trace_start"() <{level = 10 : i32, message = "bqd,bkd->bqk"}> : () -> ()
    %cst_22 = arith.constant dense<0.000000e+00> : vector<2x8x8xf32>
    %51 = tpu.matmul %47, %50, %cst_22 {dimension_numbers = #tpu.dot_dimension_numbers<[2], [2], [1], [1], [0, 0, 0, 1, 1, 1], [0], [0]>} : vector<2x8x8xbf16>, vector<2x8x8xbf16>, vector<2x8x8xf32> -> vector<2x8x8xf32>
    %cst_23 = arith.constant -1.000000e+09 : f32
    "tpu.trace_stop"() : () -> ()
    %52 = vector.broadcast %cst_23 : f32 to vector<2x8x8xf32>
    %53 = arith.select %17, %52, %51 : vector<2x8x8xi1>, vector<2x8x8xf32>
    %54 = vector.shape_cast %26 : vector<2x8x8xf32> to vector<2x1x8x8xf32>
    %55 = vector.shape_cast %35 : vector<2x8x8xf32> to vector<2x1x8x8xf32>
    %56 = vector.shape_cast %44 : vector<2x8x8xf32> to vector<2x1x8x8xf32>
    %57 = vector.shape_cast %53 : vector<2x8x8xf32> to vector<2x1x8x8xf32>
    %58 = tpu.concatenate %54, %55, %56, %57 in 1 : vector<2x1x8x8xf32>, vector<2x1x8x8xf32>, vector<2x1x8x8xf32>, vector<2x1x8x8xf32> -> vector<2x4x8x8xf32>
    %cst_24 = arith.constant dense<0xFF800000> : vector<2x4x8xf32>
    %59 = vector.multi_reduction <maximumf>, %58, %cst_24 [3] : vector<2x4x8x8xf32> to vector<2x4x8xf32>
    %60 = vector.shape_cast %59 : vector<2x4x8xf32> to vector<2x4x8x1xf32>
    %61 = vector.broadcast %60 : vector<2x4x8x1xf32> to vector<2x4x8x8xf32>
    %62 = arith.subf %58, %61 : vector<2x4x8x8xf32>
    %63 = math.exp %62 : vector<2x4x8x8xf32>
    %cst_25 = arith.constant dense<0.000000e+00> : vector<2x4x8xf32>
    %64 = vector.multi_reduction <add>, %63, %cst_25 [3] : vector<2x4x8x8xf32> to vector<2x4x8xf32>
    %65 = vector.shape_cast %64 : vector<2x4x8xf32> to vector<2x4x8x1xf32>
    %66 = tpu.reciprocal %65 {approx = true} : vector<2x4x8x1xf32> -> vector<2x4x8x1xf32>
    %67 = vector.broadcast %66 : vector<2x4x8x1xf32> to vector<2x4x8x8xf32>
    %68 = arith.mulf %63, %67 : vector<2x4x8x8xf32>
    %c0_26 = arith.constant 0 : index
    %c0_27 = arith.constant 0 : index
    %c0_28 = arith.constant 0 : index
    %c0_29 = arith.constant 0 : index
    %69 = vector.load %arg8[%c0_26, %c0_27, %c0_28, %c0_29] : memref<2x4x8x8xf32, #tpu.memory_space<vmem>>, vector<2x4x8x8xf32>
    tpu.vector_store %arg8[%c0_26, %c0_27, %c0_28, %c0_29], %68 {strides = array<i32>} : memref<2x4x8x8xf32, #tpu.memory_space<vmem>>, vector<2x4x8x8xf32>,
    %70 = vector.extract_strided_slice %14 {offsets = [0, 64], sizes = [16, 8], strides = [1, 1]} : vector<16x96xf32> to vector<16x8xf32>
    %71 = vector.shape_cast %70 : vector<16x8xf32> to vector<2x8x8xf32>
    %72 = arith.truncf %71 : vector<2x8x8xf32> to vector<2x8x8xbf16>
    %73 = vector.extract_strided_slice %68 {offsets = [0, 0, 0, 0], sizes = [2, 1, 8, 8], strides = [1, 1, 1, 1]} : vector<2x4x8x8xf32> to vector<2x1x8x8xf32>
    %74 = vector.shape_cast %73 : vector<2x1x8x8xf32> to vector<2x8x8xf32>
    %75 = arith.truncf %74 : vector<2x8x8xf32> to vector<2x8x8xbf16>
    "tpu.trace_start"() <{level = 10 : i32, message = "bqk,bkd->bqd"}> : () -> ()
    %cst_30 = arith.constant dense<0.000000e+00> : vector<2x8x8xf32>
    %76 = tpu.matmul %75, %72, %cst_30 {dimension_numbers = #tpu.dot_dimension_numbers<[2], [1], [1], [2], [0, 0, 0, 1, 1, 2], [0], [0]>} : vector<2x8x8xbf16>, vector<2x8x8xbf16>, vector<2x8x8xf32> -> vector<2x8x8xf32>
    "tpu.trace_stop"() : () -> ()
    %77 = vector.shape_cast %76 : vector<2x8x8xf32> to vector<16x8xf32>
    %78 = vector.extract_strided_slice %14 {offsets = [0, 72], sizes = [16, 8], strides = [1, 1]} : vector<16x96xf32> to vector<16x8xf32>
    %79 = vector.shape_cast %78 : vector<16x8xf32> to vector<2x8x8xf32>
    %80 = arith.truncf %79 : vector<2x8x8xf32> to vector<2x8x8xbf16>
    %81 = vector.extract_strided_slice %68 {offsets = [0, 1, 0, 0], sizes = [2, 1, 8, 8], strides = [1, 1, 1, 1]} : vector<2x4x8x8xf32> to vector<2x1x8x8xf32>
    %82 = vector.shape_cast %81 : vector<2x1x8x8xf32> to vector<2x8x8xf32>
    %83 = arith.truncf %82 : vector<2x8x8xf32> to vector<2x8x8xbf16>
    "tpu.trace_start"() <{level = 10 : i32, message = "bqk,bkd->bqd"}> : () -> ()
    %cst_31 = arith.constant dense<0.000000e+00> : vector<2x8x8xf32>
    %84 = tpu.matmul %83, %80, %cst_31 {dimension_numbers = #tpu.dot_dimension_numbers<[2], [1], [1], [2], [0, 0, 0, 1, 1, 2], [0], [0]>} : vector<2x8x8xbf16>, vector<2x8x8xbf16>, vector<2x8x8xf32> -> vector<2x8x8xf32>
    "tpu.trace_stop"() : () -> ()
    %85 = vector.shape_cast %84 : vector<2x8x8xf32> to vector<16x8xf32>
    %86 = vector.extract_strided_slice %14 {offsets = [0, 80], sizes = [16, 8], strides = [1, 1]} : vector<16x96xf32> to vector<16x8xf32>
    %87 = vector.shape_cast %86 : vector<16x8xf32> to vector<2x8x8xf32>
    %88 = arith.truncf %87 : vector<2x8x8xf32> to vector<2x8x8xbf16>
    %89 = vector.extract_strided_slice %68 {offsets = [0, 2, 0, 0], sizes = [2, 1, 8, 8], strides = [1, 1, 1, 1]} : vector<2x4x8x8xf32> to vector<2x1x8x8xf32>
    %90 = vector.shape_cast %89 : vector<2x1x8x8xf32> to vector<2x8x8xf32>
    %91 = arith.truncf %90 : vector<2x8x8xf32> to vector<2x8x8xbf16>
    "tpu.trace_start"() <{level = 10 : i32, message = "bqk,bkd->bqd"}> : () -> ()
    %cst_32 = arith.constant dense<0.000000e+00> : vector<2x8x8xf32>
    %92 = tpu.matmul %91, %88, %cst_32 {dimension_numbers = #tpu.dot_dimension_numbers<[2], [1], [1], [2], [0, 0, 0, 1, 1, 2], [0], [0]>} : vector<2x8x8xbf16>, vector<2x8x8xbf16>, vector<2x8x8xf32> -> vector<2x8x8xf32>
    "tpu.trace_stop"() : () -> ()
    %93 = vector.shape_cast %92 : vector<2x8x8xf32> to vector<16x8xf32>
    %94 = vector.extract_strided_slice %14 {offsets = [0, 88], sizes = [16, 8], strides = [1, 1]} : vector<16x96xf32> to vector<16x8xf32>
    %95 = vector.shape_cast %94 : vector<16x8xf32> to vector<2x8x8xf32>
    %96 = arith.truncf %95 : vector<2x8x8xf32> to vector<2x8x8xbf16>
    %97 = vector.extract_strided_slice %68 {offsets = [0, 3, 0, 0], sizes = [2, 1, 8, 8], strides = [1, 1, 1, 1]} : vector<2x4x8x8xf32> to vector<2x1x8x8xf32>
    %98 = vector.shape_cast %97 : vector<2x1x8x8xf32> to vector<2x8x8xf32>
    %99 = arith.truncf %98 : vector<2x8x8xf32> to vector<2x8x8xbf16>
    "tpu.trace_start"() <{level = 10 : i32, message = "bqk,bkd->bqd"}> : () -> ()
    %cst_33 = arith.constant dense<0.000000e+00> : vector<2x8x8xf32>
    %100 = tpu.matmul %99, %96, %cst_33 {dimension_numbers = #tpu.dot_dimension_numbers<[2], [1], [1], [2], [0, 0, 0, 1, 1, 2], [0], [0]>} : vector<2x8x8xbf16>, vector<2x8x8xbf16>, vector<2x8x8xf32> -> vector<2x8x8xf32>
    "tpu.trace_stop"() : () -> ()
    %101 = vector.shape_cast %100 : vector<2x8x8xf32> to vector<16x8xf32>
    %102 = tpu.concatenate %77, %85, %93, %101 in 1 : vector<16x8xf32>, vector<16x8xf32>, vector<16x8xf32>, vector<16x8xf32> -> vector<16x32xf32>
    %103 = arith.truncf %102 : vector<16x32xf32> to vector<16x32xbf16>
    %c0_34 = arith.constant 0 : index
    %c0_35 = arith.constant 0 : index
    %104 = vector.load %arg3[%c0_34, %c0_35] : memref<32x32xbf16, #tpu.memory_space<vmem>>, vector<32x32xbf16>
    %cst_36 = arith.constant dense<0.000000e+00> : vector<16x32xf32>
    %105 = tpu.matmul %103, %104, %cst_36 {dimension_numbers = #tpu.dot_dimension_numbers<[1], [0], [0], [1], [0, 0, 1, 1], [], []>} : vector<16x32xbf16>, vector<32x32xbf16>, vector<16x32xf32> -> vector<16x32xf32>
    %106 = vector.broadcast %2 : vector<1x32xf32> to vector<16x32xf32>
    %107 = arith.addf %105, %106 : vector<16x32xf32>
    %108 = arith.addf %107, %9 : vector<16x32xf32>
    %cst_37 = arith.constant dense<0.000000e+00> : vector<16xf32>
    %109 = vector.multi_reduction <add>, %108, %cst_37 [1] : vector<16x32xf32> to vector<16xf32>
    %110 = vector.shape_cast %109 : vector<16xf32> to vector<16x1xf32>
    %cst_38 = arith.constant 3.200000e+01 : f32
    %111 = vector.broadcast %cst_38 : f32 to vector<16x1xf32>
    %112 = arith.divf %110, %111 : vector<16x1xf32>
    %113 = vector.broadcast %112 : vector<16x1xf32> to vector<16x32xf32>
    %114 = arith.subf %108, %113 : vector<16x32xf32>
    %115 = arith.mulf %114, %114 : vector<16x32xf32>
    %cst_39 = arith.constant dense<0.000000e+00> : vector<16xf32>
    %116 = vector.multi_reduction <add>, %115, %cst_39 [1] : vector<16x32xf32> to vector<16xf32>
    %117 = vector.shape_cast %116 : vector<16xf32> to vector<16x1xf32>
    %cst_40 = arith.constant 3.200000e+01 : f32
    %118 = vector.broadcast %cst_40 : f32 to vector<16x1xf32>
    %119 = arith.divf %117, %118 : vector<16x1xf32>
    %120 = vector.broadcast %112 : vector<16x1xf32> to vector<16x32xf32>
    %121 = arith.subf %108, %120 : vector<16x32xf32>
    %cst_41 = arith.constant 9.99999974E-6 : f32
    %122 = vector.broadcast %cst_41 : f32 to vector<16x1xf32>
    %123 = arith.addf %119, %122 : vector<16x1xf32>
    %124 = math.rsqrt %123 : vector<16x1xf32>
    %125 = vector.broadcast %124 : vector<16x1xf32> to vector<16x32xf32>
    %126 = arith.mulf %121, %125 : vector<16x32xf32>
    %127 = vector.broadcast %3 : vector<1x32xf32> to vector<16x32xf32>
    %128 = arith.mulf %126, %127 : vector<16x32xf32>
    %129 = vector.broadcast %4 : vector<1x32xf32> to vector<16x32xf32>
    %130 = arith.addf %128, %129 : vector<16x32xf32>
    %131 = arith.truncf %130 : vector<16x32xf32> to vector<16x32xbf16>
    %c0_42 = arith.constant 0 : index
    %c0_43 = arith.constant 0 : index
    %132 = vector.load %arg4[%c0_42, %c0_43] : memref<32x64xbf16, #tpu.memory_space<vmem>>, vector<32x64xbf16>
    %cst_44 = arith.constant dense<0.000000e+00> : vector<16x64xf32>
    %133 = tpu.matmul %131, %132, %cst_44 {dimension_numbers = #tpu.dot_dimension_numbers<[1], [0], [0], [1], [0, 0, 1, 1], [], []>} : vector<16x32xbf16>, vector<32x64xbf16>, vector<16x64xf32> -> vector<16x64xf32>
    %134 = vector.broadcast %1 : vector<1x64xf32> to vector<16x64xf32>
    %135 = arith.addf %133, %134 : vector<16x64xf32>
    %cst_45 = arith.constant 0.000000e+00 : f32
    %136 = vector.broadcast %cst_45 : f32 to vector<16x64xf32>
    %137 = arith.maximumf %135, %136 : vector<16x64xf32>
    %138 = arith.truncf %137 : vector<16x64xf32> to vector<16x64xbf16>
    %c0_46 = arith.constant 0 : index
    %c0_47 = arith.constant 0 : index
    %139 = vector.load %arg5[%c0_46, %c0_47] : memref<64x32xbf16, #tpu.memory_space<vmem>>, vector<64x32xbf16>
    %cst_48 = arith.constant dense<0.000000e+00> : vector<16x32xf32>
    %140 = tpu.matmul %138, %139, %cst_48 {dimension_numbers = #tpu.dot_dimension_numbers<[1], [0], [0], [1], [0, 0, 1, 1], [], []>} : vector<16x64xbf16>, vector<64x32xbf16>, vector<16x32xf32> -> vector<16x32xf32>
    %141 = vector.broadcast %5 : vector<1x32xf32> to vector<16x32xf32>
    %142 = arith.addf %140, %141 : vector<16x32xf32>
    %143 = arith.addf %142, %130 : vector<16x32xf32>
    %cst_49 = arith.constant dense<0.000000e+00> : vector<16xf32>
    %144 = vector.multi_reduction <add>, %143, %cst_49 [1] : vector<16x32xf32> to vector<16xf32>
    %145 = vector.shape_cast %144 : vector<16xf32> to vector<16x1xf32>
    %cst_50 = arith.constant 3.200000e+01 : f32
    %146 = vector.broadcast %cst_50 : f32 to vector<16x1xf32>
    %147 = arith.divf %145, %146 : vector<16x1xf32>
    %148 = vector.broadcast %147 : vector<16x1xf32> to vector<16x32xf32>
    %149 = arith.subf %143, %148 : vector<16x32xf32>
    %150 = arith.mulf %149, %149 : vector<16x32xf32>
    %cst_51 = arith.constant dense<0.000000e+00> : vector<16xf32>
    %151 = vector.multi_reduction <add>, %150, %cst_51 [1] : vector<16x32xf32> to vector<16xf32>
    %152 = vector.shape_cast %151 : vector<16xf32> to vector<16x1xf32>
    %cst_52 = arith.constant 3.200000e+01 : f32
    %153 = vector.broadcast %cst_52 : f32 to vector<16x1xf32>
    %154 = arith.divf %152, %153 : vector<16x1xf32>
    %155 = vector.broadcast %147 : vector<16x1xf32> to vector<16x32xf32>
    %156 = arith.subf %143, %155 : vector<16x32xf32>
    %cst_53 = arith.constant 9.99999974E-6 : f32
    %157 = vector.broadcast %cst_53 : f32 to vector<16x1xf32>
    %158 = arith.addf %154, %157 : vector<16x1xf32>
    %159 = math.rsqrt %158 : vector<16x1xf32>
    %160 = vector.broadcast %159 : vector<16x1xf32> to vector<16x32xf32>
    %161 = arith.mulf %156, %160 : vector<16x32xf32>
    %162 = vector.broadcast %6 : vector<1x32xf32> to vector<16x32xf32>
    %163 = arith.mulf %161, %162 : vector<16x32xf32>
    %164 = vector.broadcast %7 : vector<1x32xf32> to vector<16x32xf32>
    %165 = arith.addf %163, %164 : vector<16x32xf32>
    %166 = vector.shape_cast %165 : vector<16x32xf32> to vector<2x8x32xf32>
    %c0_54 = arith.constant 0 : index
    %c0_55 = arith.constant 0 : index
    %c0_56 = arith.constant 0 : index
    %167 = vector.load %arg7[%c0_54, %c0_55, %c0_56] : memref<2x8x32xf32, #tpu.memory_space<vmem>>, vector<2x8x32xf32>
    tpu.vector_store %arg7[%c0_54, %c0_55, %c0_56], %166 {strides = array<i32>} : memref<2x8x32xf32, #tpu.memory_space<vmem>>, vector<2x8x32xf32>,
    return
  }
}

</mosaic_0001>

<bundles_post_ra>
// kernel: tpu_custom_call.1
= control target key start
LH: loop header
LB: loop body
LE: loop exit
PB: predicated region body
PF: predicated region fallthrough
CT: control target
= control target key end

     0   :  { %14 = vsyncpa [#allocation3], 0  ;;  %s1444_s0 = inlined_call_operand.vmem [shape: f32[2,8,32], index: 0, kind: input, shape index: {}]   ;;  %s1445_s1 = inlined_call_operand.vmem [shape: s32[2,8,8], index: 1, kind: input, shape index: {}]   ;;  %s1446_s2 = inlined_call_operand.vmem [shape: bf16[32,96], index: 2, kind: input, shape index: {}]   ;;  %s1447_s3 = inlined_call_operand.hbm [shape: bf16[32,32], index: 3, kind: input, shape index: {}]   ;;  %s1448_s4 = inlined_call_operand.hbm [shape: bf16[32,64], index: 4, kind: input, shape index: {}]   ;;  %s1449_s5 = inlined_call_operand.vmem [shape: bf16[64,32], index: 5, kind: input, shape index: {}]   ;;  %s1450_s6 = inlined_call_operand.hbm [shape: f32[8,128], index: 6, kind: input, shape index: {}]   ;;  %s1451_s7 = inlined_call_operand.hbm [shape: f32[2,8,32], index: 7, kind: output, shape index: {0}]   ;;  %s1452_s8 = inlined_call_operand.hbm [shape: f32[2,4,8,8], index: 8, kind: output, shape index: {1}]  }
   0x1   :  { %15 = vsyncpa [#allocation6], 0 }
   0x2   :  { %16 = vsyncpa [#allocation4], 0 }
   0x3   :  { %17 = vsyncpa [#allocation10], 0  ;;  %s41_s29 = sshll.u32 %s1448_s4, 4  ;;  %s1188_s30 = smov [#allocation5]   ;;  %s42_s29 = int_to_ptr.hbm [resolvable:$true] %s41_s29 }
   0x4   :  { %s43_s9 = sshll.u32 %s1188_s30, 4  ;;  %s28_s12 = sshll.u32 %s1447_s3, 4  ;;  %s44_s9 = int_to_ptr.vmem [resolvable:$true] %s43_s9  ;;  %s29_s12 = int_to_ptr.hbm [resolvable:$true] %s28_s12 }
   0x5   :  { %s1189_s13 = smov 64   ;;  %s1190_s14 = smov 4  }
   0x6   :  { %49 = dma.hbm_to_vmem [thread:$0]  %s42_s29, 256, %s44_s9, [#allocation6], %s1189_s13, %s1189_s13, %s1190_s14  }
   0x7   :  { %s1191_s15 = smov [#allocation2]   ;;  %s57_s4 = sshll.u32 %s1450_s6, 4  ;;  %s58_s4 = int_to_ptr.hbm [resolvable:$true] %s57_s4 }
   0x8   :  { %s30_s16 = sshll.u32 %s1191_s15, 4  ;;  %s1192_s19 = smov [#allocation7]   ;;  %s31_s16 = int_to_ptr.vmem [resolvable:$true] %s30_s16 }
   0x9   :  { %36 = dma.hbm_to_vmem [thread:$0]  %s29_s12, 256, %s31_s16, [#allocation3], %s1189_s13, %s1189_s13, %s1190_s14  }
   0xa   :  { %s59_s20 = sshll.u32 %s1192_s19, 4  ;;  %s60_s20 = int_to_ptr.vmem [resolvable:$true] %s59_s20 }
   0xb   :  { %62 = dma.hbm_to_vmem [thread:$0]  %s58_s4, 128, %s60_s20, [#allocation6]  }
   0xc   :  { %1180 = dma.done.wait [#allocation3], 256  }
   0xd   :  { %1181 = vsyncadd [#allocation3], 4294967040 }
   0xe   :  { %1182 = dma.done.wait [#allocation6], 384  }
   0xf   :  { %1183 = vsyncadd [#allocation6], 4294966912  ;;  %v964_v0 = vld [vmem:[%s1446_s2 + $0x8] sm:$0xff]  ;;  %v963_v1 = vld [vmem:[%s1446_s2] sm:$0xff]  ;;  %vm104_vm0 = vcmask 261120   ;;  %s1193_s2 = smov 120  }
  0x10   :  { %v1277_v2 = vld [vmem:[%s1444_s0] sm:$0xff]  ;;  %v1282_v3 = vld [vmem:[%s1444_s0 + $0x8] sm:$0xff]  ;;  %114 = vmatpush.bf16.msra.mxu0 %v964_v0  ;;  %s1194_s0 = smov 88   ;;  %s1195_s27 = smov 96   ;;  %vm133_vm1 = vcmask 64512   ;;  %vm426_vm2 = vcmask 1043456  }
  0x11   :  { %v86_v4 = vpack.c.bf16 %v1282_v3, %v1277_v2  ;;  %v1010_v5 = vld [vmem:[#allocation7] ss:$0 sm:$0xff]  ;;  %s1196_s28 = smov 80   ;;  %s1197_s29 = smov 112   ;;  %v123_v45 = vld [vmem:[%s1445_s1 + $0x8] sm:$0xff]  ;;  %vm622_vm5 = vcmask 130048  }
  0x12   :  { %s1198_s30 = smov 72   ;;  %s1199_s9 = smov 104   ;;  %v122_v44 = vld [vmem:[%s1445_s1] sm:$0xff]  ;;  %vm125_vm4 = vcmp.ne.s32.totalorder %v123_v45, 0  ;;  %vm625_vm6 = vcmask 195584   ;;  %vm793_vm14 = vcmask 523264  }
  0x13   :  { %s1200_s10 = smov 56   ;;  %vm124_vm3 = vcmp.ne.s32.totalorder %v122_v44, 0  ;;  %s1201_s1 = smov 48  }
  0x14   :  { %115 = vmatpush.bf16.msra.mxu0 %v963_v1  ;;  %s1202_s15 = smov 40   ;;  %s1203_s16 = smov 8  }
  0x15   :  { %s1204_s17 = smov 16   ;;  %s1205_s18 = smov 24  }
  0x17   :  { %911 = vmatmul.msk.bf16.vlgmr.msra.gmra.mxu0 %vm104_vm0, %v86_v4 }
  0x94   :  { %v117_v6 = vpop.f32.mrf.mxu0 }
  0x95   :  { %v118_v7 = vadd.f32 %v1010_v5, %v117_v6 }
  0x97   :  { %v126_v8 = vpack.c.bf16 %v118_v7, %v118_v7 }
  0x99   :  { %v129_v9 = vunpack.c.l.b16 %v126_v8 }
  0x9b   :  { %v1287_v10 = vpack.c.b16 %v129_v9, %v129_v9 }
  0x9c   :  { %v119_v11 = vpop.f32.mrf.mxu0 }
  0x9d   :  { %v120_v12 = vadd.f32 %v1010_v5, %v119_v11  ;;  %179 = vrot.lane.b32.xlu1 %v1287_v10, %s1193_s2 }
  0x9f   :  { %v127_v13 = vpack.c.bf16 %v120_v12, %v120_v12 }
  0xa1   :  { %v154_v14 = vunpack.c.l.b16 %v127_v13 }
  0xa3   :  { %v1290_v15 = vpack.c.b16 %v154_v14, %v154_v14 }
  0xa5   :  { %204 = vrot.lane.b32.xlu2 %v1290_v15, %s1194_s0  ;;  %156 = vrot.lane.b32.xlu0 %v1290_v15, %s1195_s27 }
  0xa6   :  { %131 = vrot.lane.b32.xlu1 %v1287_v10, %s1195_s27 }
  0xad   :  { %252 = vrot.lane.b32.xlu2 %v1290_v15, %s1196_s28  ;;  %181 = vrot.lane.b32.xlu0 %v1287_v10, %s1194_s0  ;;  %s1208_s0 = smov 128  }
  0xae   :  { %202 = vrot.lane.b32.xlu1 %v1290_v15, %s1193_s2  ;;  %s884_s2 = sshll.u32 %s1452_s8, 4  ;;  %s1209_s8 = smov [#allocation8]   ;;  %s885_s2 = int_to_ptr.hbm [resolvable:$true] %s884_s2 }
  0xaf   :  { %s869_s27 = sshll.u32 %s1209_s8, 4  ;;  %s870_s27 = int_to_ptr.vmem [resolvable:$true] %s869_s27 }
  0xb5   :  { %250 = vrot.lane.b32.xlu2 %v1290_v15, %s1197_s29  ;;  %277 = vrot.lane.b32.xlu0 %v1287_v10, %s1198_s30 }
  0xb6   :  { %229 = vrot.lane.b32.xlu1 %v1287_v10, %s1196_s28 }
  0xbd   :  { %300 = vrot.lane.b32.xlu2 %v1290_v15, %s1198_s30  ;;  %275 = vrot.lane.b32.xlu0 %v1287_v10, %s1199_s9  ;;  %s871_s30 = sshll.u32 %s1451_s7, 4  ;;  %s872_s30 = int_to_ptr.hbm [resolvable:$true] %s871_s30 }
  0xbe   :  { %298 = vrot.lane.b32.xlu1 %v1290_v15, %s1199_s9 }
  0xc5   :  { %466 = vrot.lane.b32.xlu2 %v1287_v10, %s1200_s10  ;;  %227 = vrot.lane.b32.xlu0 %v1287_v10, %s1197_s29 }
  0xc6   :  { %443 = vrot.lane.b32.xlu1 %v1290_v15, %s1189_s13 }
  0xcd   :  { %421 = vrot.lane.b32.xlu0 %v1287_v10, %s1189_s13 }
  0xff   :  { %v205_v16 = vpop.permute.xlu2 %204 }
 0x100   :  { %v210_v17 = vsel %vm133_vm1, %v205_v16, 0 }
 0x101   :  { %219 = vmatpush.bf16.xpose.msrb.mxu0 %v210_v17 }
 0x107   :  { %v253_v18 = vpop.permute.xlu2 %252 }
 0x108   :  { %v258_v27 = vsel %vm133_vm1, %v253_v18, 0 }
 0x10f   :  { %v251_v19 = vpop.permute.xlu2 %250  ;;  %v180_v20 = vpop.permute.xlu1 %179 }
 0x117   :  { %v301_v21 = vpop.permute.xlu2 %300  ;;  %v157_v22 = vpop.permute.xlu0 %156 }
 0x118   :  { %v306_v23 = vsel %vm133_vm1, %v301_v21, 0  ;;  %v132_v24 = vpop.permute.xlu1 %131  ;;  %v162_v25 = vsel %vm133_vm1, %v157_v22, 0 }
 0x119   :  { %v138_v26 = vsel %vm133_vm1, %v132_v24, 0  ;;  %171 = vmatpush.bf16.xpose.msra.mxu2 %v162_v25  ;;  %315 = vmatpush.bf16.xpose.msra.mxu0 %v306_v23 }
 0x11a   :  { %147 = vmatpush.bf16.xpose.msra.mxu1 %v138_v26 }
 0x11f   :  { %v182_v28 = vpop.permute.xlu0 %181  ;;  %v467_v31 = vpop.permute.xlu2 %466 }
 0x120   :  { %v203_v29 = vpop.permute.xlu1 %202  ;;  %913 = vmatmul.msk.bf16.vlgmr.msra.gmra.mxu2 %vm133_vm1, %v127_v13  ;;  %v187_v30 = vsel %vm133_vm1, %v182_v28, 0  ;;  %v472_v36 = vsel %vm426_vm2, %v467_v31, 0 }
 0x121   :  { %267 = vmatpush.bf16.xpose.msrb.mxu2 %v258_v27  ;;  %912 = vmatmul.msk.bf16.vlgmr.msra.gmra.mxu1 %vm133_vm1, %v126_v8 }
 0x122   :  { %915 = vmatmul.msk.bf16.vlgmr.msrb.gmra.mxu0 %vm133_vm1, %v203_v29  ;;  %196 = vmatpush.bf16.xpose.msra.mxu3 %v187_v30 }
 0x127   :  { %v278_v32 = vpop.permute.xlu0 %277 }
 0x128   :  { %v230_v33 = vpop.permute.xlu1 %229  ;;  %v283_v34 = vsel %vm133_vm1, %v278_v32, 0 }
 0x129   :  { %914 = vmatmul.msk.bf16.vlgmr.msra.gmra.mxu3 %vm133_vm1, %v180_v20  ;;  %v235_v35 = vsel %vm133_vm1, %v230_v33, 0 }
 0x12a   :  { %244 = vmatpush.bf16.xpose.msrb.mxu1 %v235_v35  ;;  %292 = vmatpush.bf16.xpose.msrb.mxu3 %v283_v34 }
 0x12f   :  { %v276_v37 = vpop.permute.xlu0 %275 }
 0x130   :  { %v299_v38 = vpop.permute.xlu1 %298  ;;  %917 = vmatmul.msk.bf16.vlgmr.msrb.gmra.mxu2 %vm133_vm1, %v251_v19 }
 0x132   :  { %481 = vmatpush.bf16.msra.mxu3 %v472_v36  ;;  %919 = vmatmul.msk.bf16.vlgmr.msra.gmra.mxu0 %vm133_vm1, %v299_v38 }
 0x137   :  { %v228_v39 = vpop.permute.xlu0 %227 }
 0x138   :  { %v444_v40 = vpop.permute.xlu1 %443  ;;  %916 = vmatmul.msk.bf16.vlgmr.msrb.gmra.mxu1 %vm133_vm1, %v228_v39 }
 0x139   :  { %v449_v41 = vsel %vm426_vm2, %v444_v40, 0  ;;  %918 = vmatmul.msk.bf16.vlgmr.msrb.gmra.mxu3 %vm133_vm1, %v276_v37 }
 0x13a   :  { %458 = vmatpush.bf16.msra.mxu2 %v449_v41 }
 0x13f   :  { %v422_v42 = vpop.permute.xlu0 %421 }
 0x140   :  { %v428_v43 = vsel %vm426_vm2, %v422_v42, 0 }
 0x141   :  { %437 = vmatpush.bf16.msra.mxu1 %v428_v43 }
 0x19e   :  { %v149_v46 = vpop.f32.mrf.mxu1 }
 0x19f   :  { %v221_v47 = vpop.f32.mrf.mxu0  ;;  %v177_v48 = vsel %vm124_vm3, -1e+09, %v149_v46 }
 0x1a0   :  { %v226_v49 = vsel %vm125_vm4, -1e+09, %v221_v47  ;;  %v323_v50 = vsel %vm133_vm1, %v177_v48, -inf }
 0x1a1   :  { %v338_v51 = vsel %vm133_vm1, %v226_v49, -inf  ;;  %324 = vmax.xlane.f32.xlu1 %v323_v50 }
 0x1a2   :  { %339 = vmax.xlane.f32.xlu2 %v338_v51 }
 0x1a3   :  { %v173_v52 = vpop.f32.mrf.mxu2 }
 0x1a4   :  { %v178_v53 = vsel %vm125_vm4, -1e+09, %v173_v52 }
 0x1a5   :  { %v335_v56 = vsel %vm133_vm1, %v178_v53, -inf }
 0x1a6   :  { %v151_v54 = vpop.f32.mrf.mxu1 }
 0x1a7   :  { %v223_v55 = vpop.f32.mrf.mxu0 }
 0x1aa   :  { %336 = vmax.xlane.f32.xlu2 %v335_v56 }
 0x1ab   :  { %v175_v57 = vpop.f32.mrf.mxu2 }
 0x1ac   :  { %v198_v58 = vpop.f32.mrf.mxu3 }
 0x1ad   :  { %v225_v59 = vsel %vm124_vm3, -1e+09, %v198_v58 }
 0x1ae   :  { %v326_v61 = vsel %vm133_vm1, %v225_v59, -inf }
 0x1af   :  { %v317_v60 = vpop.f32.mrf.mxu0  ;;  %327 = vmax.xlane.f32.xlu0 %v326_v61 }
 0x1b0   :  { %v322_v62 = vsel %vm125_vm4, -1e+09, %v317_v60 }
 0x1b1   :  { %v344_v63 = vsel %vm133_vm1, %v322_v62, -inf }
 0x1b2   :  { %345 = vmax.xlane.f32.xlu2 %v344_v63 }
 0x1b3   :  { %v269_v0 = vpop.f32.mrf.mxu2 }
 0x1b4   :  { %v200_v1 = vpop.f32.mrf.mxu3  ;;  %v274_v4 = vsel %vm125_vm4, -1e+09, %v269_v0 }
 0x1b5   :  { %v246_v5 = vpop.f32.mrf.mxu1  ;;  %v341_v7 = vsel %vm133_vm1, %v274_v4, -inf }
 0x1b6   :  { %v1355_v16 = vsel %vm124_vm3, -1e+09, %v246_v5 }
 0x1b7   :  { %v319_v6 = vpop.f32.mrf.mxu0  ;;  %v329_v17 = vsel %vm133_vm1, %v1355_v16, -inf }
 0x1ba   :  { %342 = vmax.xlane.f32.xlu2 %v341_v7  ;;  %487 = vrot.lane.b32.xlu1 %v1290_v15, %s1200_s10 }
 0x1bb   :  { %v271_v8 = vpop.f32.mrf.mxu2 }
 0x1bc   :  { %v294_v9 = vpop.f32.mrf.mxu3 }
 0x1bd   :  { %v321_v11 = vsel %vm124_vm3, -1e+09, %v294_v9  ;;  %v248_v12 = vpop.f32.mrf.mxu1 }
 0x1be   :  { %v332_v13 = vsel %vm133_vm1, %v321_v11, -inf }
 0x1bf   :  { %333 = vmax.xlane.f32.xlu0 %v332_v13 }
 0x1c4   :  { %v296_v14 = vpop.f32.mrf.mxu3 }
 0x1d2   :  { %531 = vrot.lane.b32.xlu2 %v1290_v15, %s1201_s1 }
 0x1e4   :  { %330 = vmax.xlane.f32.xlu1 %v329_v17 }
 0x214   :  { %v325_v19 = vpop.xlane.xlu1 %324 }
 0x215   :  { %v340_v18 = vpop.xlane.xlu2 %339  ;;  %v347_v21 = vsub.f32 %v177_v48, %v325_v19 }
 0x216   :  { %v352_v20 = vsub.f32 %v226_v49, %v340_v18 }
 0x217   :  { %v355_v23 = vmul.f32 1.442695, %v347_v21 }
 0x218   :  { %v365_v22 = vmul.f32 1.442695, %v352_v20 }
 0x21a   :  { %1018 = vpow2.f32 %v365_v22 }
 0x21b   :  { %1020 = vpow2.f32 %v355_v23 }
 0x21d   :  { %v337_v24 = vpop.xlane.xlu2 %336 }
 0x21e   :  { %v351_v25 = vsub.f32 %v178_v53, %v337_v24 }
 0x220   :  { %v1019_v26 = vpop.eup %1018  ;;  %v363_v27 = vmul.f32 1.442695, %v351_v25 }
 0x221   :  { %v1021_v28 = vpop.eup %1020  ;;  %v386_v29 = vsel %vm133_vm1, %v1019_v26, 0.0 }
 0x222   :  { %1022 = vpow2.f32 %v363_v27  ;;  %v371_v30 = vsel %vm133_vm1, %v1021_v28, 0.0  ;;  %387 = vadd.xlane.f32.xlu0 %v386_v29  ;;  %v328_v31 = vpop.xlane.xlu0 %327 }
 0x223   :  { %372 = vadd.xlane.f32.xlu2 %v371_v30  ;;  %v348_v32 = vsub.f32 %v225_v59, %v328_v31 }
 0x225   :  { %v346_v33 = vpop.xlane.xlu2 %345  ;;  %v357_v34 = vmul.f32 1.442695, %v348_v32 }
 0x226   :  { %v354_v35 = vsub.f32 %v322_v62, %v346_v33 }
 0x227   :  { %1024 = vpow2.f32 %v357_v34 }
 0x228   :  { %v1023_v36 = vpop.eup %1022  ;;  %v369_v37 = vmul.f32 1.442695, %v354_v35 }
 0x229   :  { %v383_v38 = vsel %vm133_vm1, %v1023_v36, 0.0 }
 0x22a   :  { %1026 = vpow2.f32 %v369_v37  ;;  %384 = vadd.xlane.f32.xlu0 %v383_v38 }
 0x22c   :  { %v488_v40 = vpop.permute.xlu1 %487 }
 0x22d   :  { %v343_v39 = vpop.xlane.xlu2 %342  ;;  %v1025_v41 = vpop.eup %1024  ;;  %v493_v43 = vsel %vm426_vm2, %v488_v40, 0 }
 0x22e   :  { %v353_v42 = vsub.f32 %v274_v4, %v343_v39  ;;  %502 = vmatpush.bf16.msrb.mxu0 %v493_v43  ;;  %v374_v44 = vsel %vm133_vm1, %v1025_v41, 0.0 }
 0x22f   :  { %375 = vadd.xlane.f32.xlu1 %v374_v44 }
 0x230   :  { %v1027_v45 = vpop.eup %1026  ;;  %v367_v46 = vmul.f32 1.442695, %v353_v42 }
 0x231   :  { %v392_v47 = vsel %vm133_vm1, %v1027_v45, 0.0 }
 0x232   :  { %1028 = vpow2.f32 %v367_v46  ;;  %393 = vadd.xlane.f32.xlu0 %v392_v47  ;;  %v334_v48 = vpop.xlane.xlu0 %333 }
 0x233   :  { %v350_v49 = vsub.f32 %v321_v11, %v334_v48 }
 0x235   :  { %v532_v50 = vpop.permute.xlu2 %531  ;;  %v361_v51 = vmul.f32 1.442695, %v350_v49 }
 0x236   :  { %v537_v52 = vsel %vm426_vm2, %v532_v50, 0 }
 0x237   :  { %546 = vmatpush.bf16.msrb.mxu2 %v537_v52  ;;  %1030 = vpow2.f32 %v361_v51 }
 0x238   :  { %v1029_v53 = vpop.eup %1028 }
 0x239   :  { %v389_v54 = vsel %vm133_vm1, %v1029_v53, 0.0 }
 0x23a   :  { %390 = vadd.xlane.f32.xlu0 %v389_v54 }
 0x23d   :  { %v1031_v55 = vpop.eup %1030 }
 0x23e   :  { %v380_v56 = vsel %vm133_vm1, %v1031_v55, 0.0 }
 0x23f   :  { %381 = vadd.xlane.f32.xlu2 %v380_v56 }
 0x24e   :  { %510 = vrot.lane.b32.xlu0 %v1287_v10, %s1201_s1 }
 0x257   :  { %v331_v57 = vpop.xlane.xlu1 %330  ;;  %575 = vrot.lane.b32.xlu2 %v1290_v15, %s1202_s15 }
 0x258   :  { %v349_v58 = vsub.f32 %v1355_v16, %v331_v57  ;;  %v966_v57 = vld [vmem:[#allocation2 + $0x8] sm:$0xff] }
 0x25a   :  { %v359_v59 = vmul.f32 1.442695, %v349_v58  ;;  %v965_v58 = vld [vmem:[#allocation2] sm:$0xff] }
 0x25c   :  { %1032 = vpow2.f32 %v359_v59 }
 0x262   :  { %v1033_v60 = vpop.eup %1032 }
 0x263   :  { %v377_v61 = vsel %vm133_vm1, %v1033_v60, 0.0 }
 0x264   :  { %378 = vadd.xlane.f32.xlu1 %v377_v61 }
 0x27d   :  { %554 = vrot.lane.b32.xlu1 %v1287_v10, %s1202_s15 }
 0x295   :  { %v388_v62 = vpop.xlane.xlu0 %387 }
 0x296   :  { %v373_v63 = vpop.xlane.xlu2 %372  ;;  %1034 = vrcp.f32 %v388_v62 }
 0x297   :  { %1036 = vrcp.f32 %v373_v63 }
 0x29c   :  { %v1035_v0 = vpop.eup %1034 }
 0x29d   :  { %v1037_v1 = vpop.eup %1036  ;;  %v408_v4 = vmul.f32 %v1035_v0, %v1019_v26  ;;  %v385_v5 = vpop.xlane.xlu0 %384 }
 0x29e   :  { %v403_v6 = vmul.f32 %v1037_v1, %v1021_v28  ;;  %1038 = vrcp.f32 %v385_v5 }
 0x29f   :  { %416 = vst.msk [vmem:[#allocation9 + $0x28] sm:$0xff] %vm133_vm1, %v408_v4  ;;  %v465_v15 = vpack.c.bf16 %v408_v4, %v408_v4 }
 0x2a0   :  { %411 = vst.msk [vmem:[#allocation9] sm:$0xff] %vm133_vm1, %v403_v6  ;;  %v419_v7 = vpack.c.bf16 %v403_v6, %v403_v6 }
 0x2a1   :  { %923 = vmatmul.msk.bf16.vlgmr.msrb.gmra.mxu0 %vm133_vm1, %v465_v15 }
 0x2a2   :  { %920 = vmatmul.msk.bf16.vlgmr.msra.gmra.mxu1 %vm133_vm1, %v419_v7  ;;  %v376_v10 = vpop.xlane.xlu1 %375 }
 0x2a3   :  { %1040 = vrcp.f32 %v376_v10 }
 0x2a4   :  { %v1039_v8 = vpop.eup %1038 }
 0x2a5   :  { %v407_v9 = vmul.f32 %v1039_v8, %v1023_v36  ;;  %v394_v11 = vpop.xlane.xlu0 %393 }
 0x2a6   :  { %1042 = vrcp.f32 %v394_v11 }
 0x2a7   :  { %415 = vst.msk [vmem:[#allocation9 + $0x20] sm:$0xff] %vm133_vm1, %v407_v9  ;;  %v420_v12 = vpack.c.bf16 %v407_v9, %v407_v9 }
 0x2a9   :  { %921 = vmatmul.msk.bf16.vlgmr.msra.gmra.mxu2 %vm133_vm1, %v420_v12  ;;  %v1041_v13 = vpop.eup %1040  ;;  %v1011_v12 = vld [vmem:[#allocation7 + $0x2] ss:$0 sm:$0xff] }
 0x2aa   :  { %v404_v14 = vmul.f32 %v1041_v13, %v1025_v41 }
 0x2ac   :  { %v1043_v16 = vpop.eup %1042  ;;  %412 = vst.msk [vmem:[#allocation9 + $0x8] sm:$0xff] %vm133_vm1, %v404_v14  ;;  %v464_v17 = vpack.c.bf16 %v404_v14, %v404_v14 }
 0x2ad   :  { %v410_v18 = vmul.f32 %v1043_v16, %v1027_v45  ;;  %v391_v19 = vpop.xlane.xlu0 %390 }
 0x2ae   :  { %1044 = vrcp.f32 %v391_v19  ;;  %922 = vmatmul.msk.bf16.vlgmr.msra.gmra.mxu3 %vm133_vm1, %v464_v17 }
 0x2af   :  { %418 = vst.msk [vmem:[#allocation9 + $0x38] sm:$0xff] %vm133_vm1, %v410_v18  ;;  %v553_v28 = vpack.c.bf16 %v410_v18, %v410_v18 }
 0x2b2   :  { %v382_v20 = vpop.xlane.xlu2 %381 }
 0x2b3   :  { %1046 = vrcp.f32 %v382_v20 }
 0x2b4   :  { %v1045_v21 = vpop.eup %1044 }
 0x2b5   :  { %v409_v22 = vmul.f32 %v1045_v21, %v1029_v53 }
 0x2b7   :  { %417 = vst.msk [vmem:[#allocation9 + $0x30] sm:$0xff] %vm133_vm1, %v409_v22  ;;  %v509_v23 = vpack.c.bf16 %v409_v22, %v409_v22  ;;  %v1206_v22 = vmov 32.0  }
 0x2b9   :  { %925 = vmatmul.msk.bf16.vlgmr.msrb.gmra.mxu2 %vm133_vm1, %v509_v23  ;;  %v1047_v24 = vpop.eup %1046 }
 0x2ba   :  { %v406_v25 = vmul.f32 %v1047_v24, %v1031_v55  ;;  %v576_v26 = vpop.permute.xlu2 %575 }
 0x2bb   :  { %v581_v27 = vsel %vm426_vm2, %v576_v26, 0 }
 0x2bc   :  { %414 = vst.msk [vmem:[#allocation9 + $0x18] sm:$0xff] %vm133_vm1, %v406_v25  ;;  %590 = vmatpush.bf16.msra.mxu0 %v581_v27  ;;  %v552_v37 = vpack.c.bf16 %v406_v25, %v406_v25 }
 0x2bf   :  { %927 = vmatmul.msk.bf16.vlgmr.msra.gmra.mxu0 %vm133_vm1, %v553_v28 }
 0x2c0   :  { %v511_v29 = vpop.permute.xlu0 %510 }
 0x2c1   :  { %v516_v30 = vsel %vm426_vm2, %v511_v29, 0 }
 0x2c2   :  { %525 = vmatpush.bf16.msrb.mxu1 %v516_v30 }
 0x2c6   :  { %655 = vmatpush.bf16.msra.mxu1 %v966_v57  ;;  %v1012_v57 = vld [vmem:[#allocation7 + $0x3] ss:$0 sm:$0xff] }
 0x2ca   :  { %656 = vmatpush.bf16.msra.mxu1 %v965_v58 }
 0x2d7   :  { %v379_v31 = vpop.xlane.xlu1 %378 }
 0x2d8   :  { %1048 = vrcp.f32 %v379_v31 }
 0x2d9   :  { %1050 = vrcp.f32 %v1206_v22 }
 0x2de   :  { %v1049_v32 = vpop.eup %1048 }
 0x2df   :  { %v405_v33 = vmul.f32 %v1049_v32, %v1033_v60  ;;  %v1051_v23 = vpop.eup %1050 }
 0x2e0   :  { %v672_v24 = vmul.f32 32.0, %v1051_v23  ;;  %vm676_vm7 = vweird.f32 %v1051_v23 }
 0x2e1   :  { %413 = vst.msk [vmem:[#allocation9 + $0x10] sm:$0xff] %vm133_vm1, %v405_v33  ;;  %v508_v34 = vpack.c.bf16 %v405_v33, %v405_v33 }
 0x2e2   :  { %v673_v25 = vsub.f32 1.0, %v672_v24 }
 0x2e3   :  { %924 = vmatmul.msk.bf16.vlgmr.msrb.gmra.mxu1 %vm133_vm1, %v508_v34 }
 0x2e4   :  { %v674_v26 = vmul.f32 %v1051_v23, %v673_v25 }
 0x2e6   :  { %v675_v27 = vadd.f32 %v1051_v23, %v674_v26 }
 0x2e8   :  { %v1401_v28 = vsel %vm676_vm7, %v1051_v23, %v675_v27 }
 0x2ef   :  { %v555_v35 = vpop.permute.xlu1 %554 }
 0x2f0   :  { %v560_v36 = vsel %vm426_vm2, %v555_v35, 0 }
 0x2f1   :  { %569 = vmatpush.bf16.msrb.mxu3 %v560_v36 }
 0x2f4   :  { %926 = vmatmul.msk.bf16.vlgmr.msrb.gmra.mxu3 %vm133_vm1, %v552_v37  ;;  %v968_v37 = vld [vmem:[#allocation5 + $0x8] sm:$0xff] }
 0x2f5   :  { %749 = vmatpush.bf16.msra.mxu2 %v968_v37 }
 0x31e   :  { %v504_v38 = vpop.f32.mrf.mxu0 }
 0x31f   :  { %v439_v39 = vpop.f32.mrf.mxu1 }
 0x326   :  { %v506_v40 = vpop.f32.mrf.mxu0 }
 0x327   :  { %v441_v41 = vpop.f32.mrf.mxu1 }
 0x328   :  { %v967_v41 = vld [vmem:[#allocation5] sm:$0xff] }
 0x329   :  { %750 = vmatpush.bf16.msra.mxu2 %v967_v41 }
 0x32c   :  { %v460_v42 = vpop.f32.mrf.mxu2 }
 0x331   :  { %v483_v43 = vpop.f32.mrf.mxu3 }
 0x332   :  { %v995_v44 = vpack.i.bf16 %v504_v38, %v483_v43 }
 0x334   :  { %v462_v45 = vpop.f32.mrf.mxu2  ;;  %996 = vrot.lane.b32.xlu0 %v995_v44, %s1203_s16 }
 0x339   :  { %v485_v46 = vpop.f32.mrf.mxu3 }
 0x33c   :  { %v548_v47 = vpop.f32.mrf.mxu2  ;;  %v592_v48 = vpop.f32.mrf.mxu0 }
 0x344   :  { %v550_v49 = vpop.f32.mrf.mxu2  ;;  %v594_v50 = vpop.f32.mrf.mxu0 }
 0x360   :  { %v527_v51 = vpop.f32.mrf.mxu1 }
 0x361   :  { %v1000_v52 = vpack.i.bf16 %v548_v47, %v527_v51 }
 0x363   :  { %1001 = vrot.lane.b32.xlu1 %v1000_v52, %s1204_s17 }
 0x368   :  { %v529_v53 = vpop.f32.mrf.mxu1 }
 0x377   :  { %v571_v54 = vpop.f32.mrf.mxu3 }
 0x378   :  { %v1005_v55 = vpack.i.bf16 %v592_v48, %v571_v54 }
 0x37a   :  { %1006 = vrot.lane.b32.xlu2 %v1005_v55, %s1205_s18 }
 0x37f   :  { %v573_v56 = vpop.f32.mrf.mxu3 }
 0x3a6   :  { %v997_v59 = vpop.permute.xlu0 %996 }
 0x3a7   :  { %v999_v60 = vunpack.i.h.bf16 %v997_v59  ;;  %v998_v61 = vunpack.i.l.bf16 %v997_v59 }
 0x3a9   :  { %v621_v4 = vsel %vm133_vm1, %v460_v42, %v999_v60  ;;  %v620_v5 = vsel %vm133_vm1, %v439_v39, %v998_v61  ;;  %v1013_v61 = vld [vmem:[#allocation7 + $0x4] ss:$0 sm:$0xff] }
 0x3d4   :  { %v1007_v62 = vpop.permute.xlu2 %1006 }
 0x3d5   :  { %v1002_v63 = vpop.permute.xlu1 %1001  ;;  %v1009_v6 = vunpack.i.h.bf16 %v1007_v62  ;;  %v1008_v15 = vunpack.i.l.bf16 %v1007_v62 }
 0x3d6   :  { %v1004_v0 = vunpack.i.h.bf16 %v1002_v63  ;;  %v1003_v1 = vunpack.i.l.bf16 %v1002_v63 }
 0x3d8   :  { %v623_v7 = vsel %vm622_vm5, %v620_v5, %v1003_v1  ;;  %v624_v10 = vsel %vm622_vm5, %v621_v4, %v1004_v0 }
 0x3d9   :  { %v626_v8 = vsel %vm625_vm6, %v623_v7, %v1008_v15  ;;  %v627_v9 = vsel %vm625_vm6, %v624_v10, %v1009_v6  ;;  %v972_v6 = vld [vmem:[%s1449_s5 + $0x18] sm:$0xff]  ;;  %v971_v15 = vld [vmem:[%s1449_s5 + $0x10] sm:$0xff]  ;;  %v970_v7 = vld [vmem:[%s1449_s5 + $0x8] sm:$0xff] }
 0x3da   :  { %v628_v11 = vpack.c.bf16 %v627_v9, %v626_v8  ;;  %801 = vmatpush.bf16.msra.mxu3 %v972_v6  ;;  %v969_v10 = vld [vmem:[%s1449_s5] sm:$0xff]  ;;  %s1207_s5 = smov [#allocation9]  }
 0x3db   :  { %v1014_v9 = vld [vmem:[#allocation7 + $0x1] ss:$0 sm:$0xff]  ;;  %s882_s24 = sshll.u32 %s1207_s5, 4  ;;  %s883_s24 = int_to_ptr.vmem [resolvable:$true] %s882_s24 }
 0x3dc   :  { %936 = vmatmul.msk.bf16.vlgmr.msra.gmra.mxu1 %vm104_vm0, %v628_v11  ;;  %890 = dma.vmem_to_hbm [thread:$0]  %s883_s24, 1024, %s885_s2, [#allocation10], %s1208_s0, %s1208_s0, %s1203_s16  }
 0x3de   :  { %802 = vmatpush.bf16.msra.mxu3 %v971_v15 }
 0x3e2   :  { %803 = vmatpush.bf16.msra.mxu3 %v970_v7 }
 0x3e6   :  { %804 = vmatpush.bf16.msra.mxu3 %v969_v10 }
 0x459   :  { %v658_v13 = vpop.f32.mrf.mxu1 }
 0x45a   :  { %v659_v14 = vadd.f32 %v1011_v12, %v658_v13 }
 0x45c   :  { %v663_v16 = vadd.f32 %v659_v14, %v1277_v2 }
 0x45e   :  { %v665_v17 = vsel %vm104_vm0, %v663_v16, 0.0 }
 0x45f   :  { %666 = vadd.xlane.f32.xlu0 %v665_v17 }
 0x461   :  { %v660_v18 = vpop.f32.mrf.mxu1 }
 0x462   :  { %v661_v19 = vadd.f32 %v1011_v12, %v660_v18  ;;  %v1015_v18 = vld [vmem:[#allocation7 + $0x5] ss:$0 sm:$0xff] }
 0x464   :  { %v664_v20 = vadd.f32 %v661_v19, %v1282_v3 }
 0x466   :  { %v668_v21 = vsel %vm104_vm0, %v664_v20, 0.0 }
 0x467   :  { %669 = vadd.xlane.f32.xlu1 %v668_v21 }
 0x4d2   :  { %v667_v2 = vpop.xlane.xlu0 %666 }
 0x4d3   :  { %v678_v29 = vmul.f32 %v1401_v28, %v667_v2 }
 0x4d5   :  { %v680_v30 = vsub.f32 %v663_v16, %v678_v29 }
 0x4d7   :  { %v682_v31 = vmul.f32 %v680_v30, %v680_v30 }
 0x4d9   :  { %v684_v3 = vsel %vm104_vm0, %v682_v31, 0.0 }
 0x4da   :  { %v670_v32 = vpop.xlane.xlu1 %669  ;;  %685 = vadd.xlane.f32.xlu2 %v684_v3 }
 0x4db   :  { %v679_v33 = vmul.f32 %v1401_v28, %v670_v32 }
 0x4dd   :  { %v681_v34 = vsub.f32 %v664_v20, %v679_v33 }
 0x4df   :  { %v683_v35 = vmul.f32 %v681_v34, %v681_v34 }
 0x4e1   :  { %v687_v36 = vsel %vm104_vm0, %v683_v35, 0.0 }
 0x4e2   :  { %688 = vadd.xlane.f32.xlu0 %v687_v36 }
 0x54d   :  { %v686_v38 = vpop.xlane.xlu2 %685 }
 0x54e   :  { %v690_v39 = vmul.f32 %v686_v38, %v1401_v28 }
 0x550   :  { %v692_v40 = vadd.f32 1e-05, %v690_v39 }
 0x552   :  { %1052 = vrsqrt.f32 %v692_v40  ;;  %vm700_vm9 = vweird.f32 %v692_v40 }
 0x555   :  { %v689_v42 = vpop.xlane.xlu0 %688 }
 0x556   :  { %v691_v43 = vmul.f32 %v689_v42, %v1401_v28 }
 0x558   :  { %v1053_v44 = vpop.eup %1052  ;;  %v693_v45 = vadd.f32 1e-05, %v691_v43 }
 0x559   :  { %v695_v46 = vmul.f32 %v1053_v44, %v692_v40  ;;  %vm701_vm8 = vweird.f32 %v1053_v44 }
 0x55a   :  { %1054 = vrsqrt.f32 %v693_v45  ;;  %vm702_vm10 = vmor %vm700_vm9, %vm701_vm8  ;;  %vm710_vm12 = vweird.f32 %v693_v45 }
 0x55b   :  { %v696_v47 = vmul.f32 %v1053_v44, %v695_v46 }
 0x55d   :  { %v697_v48 = vmul.f32 0.5, %v696_v47 }
 0x55f   :  { %v698_v49 = vsub.f32 1.5, %v697_v48 }
 0x560   :  { %v1055_v50 = vpop.eup %1054 }
 0x561   :  { %v699_v51 = vmul.f32 %v1053_v44, %v698_v49  ;;  %v705_v52 = vmul.f32 %v1055_v50, %v693_v45  ;;  %vm711_vm11 = vweird.f32 %v1055_v50 }
 0x562   :  { %vm712_vm13 = vmor %vm710_vm12, %vm711_vm11 }
 0x563   :  { %v706_v53 = vmul.f32 %v1055_v50, %v705_v52  ;;  %v703_v54 = vsel %vm702_vm10, %v1053_v44, %v699_v51 }
 0x564   :  { %v714_v58 = vmul.f32 %v703_v54, %v680_v30 }
 0x565   :  { %v707_v55 = vmul.f32 0.5, %v706_v53  ;;  %v1017_v53 = vld [vmem:[#allocation7 + $0x7] ss:$0 sm:$0xff] }
 0x566   :  { %v717_v62 = vmul.f32 %v1012_v57, %v714_v58 }
 0x567   :  { %v708_v56 = vsub.f32 1.5, %v707_v55 }
 0x568   :  { %v720_v1 = vadd.f32 %v1013_v61, %v717_v62 }
 0x569   :  { %v709_v59 = vmul.f32 %v1055_v50, %v708_v56 }
 0x56b   :  { %v713_v60 = vsel %vm712_vm13, %v1055_v50, %v709_v59  ;;  %v1016_v50 = vld [vmem:[#allocation7 + $0x6] ss:$0 sm:$0xff] }
 0x56c   :  { %v715_v63 = vmul.f32 %v713_v60, %v681_v34 }
 0x56e   :  { %v718_v0 = vmul.f32 %v1012_v57, %v715_v63 }
 0x570   :  { %v721_v4 = vadd.f32 %v1013_v61, %v718_v0 }
 0x572   :  { %v722_v5 = vpack.c.bf16 %v721_v4, %v720_v1 }
 0x574   :  { %945 = vmatmul.msk.bf16.vlgmr.msra.gmra.mxu2 %vm104_vm0, %v722_v5 }
 0x5f7   :  { %v752_v8 = vpop.f32.mrf.mxu2 }
 0x5f8   :  { %v753_v11 = vadd.f32 %v1014_v9, %v752_v8 }
 0x5fa   :  { %v757_v14 = vmax.f32 %v753_v11, 0.0 }
 0x5ff   :  { %v754_v12 = vpop.f32.mrf.mxu2 }
 0x600   :  { %v755_v13 = vadd.f32 %v1014_v9, %v754_v12 }
 0x602   :  { %v758_v16 = vmax.f32 %v755_v13, 0.0 }
 0x604   :  { %v759_v17 = vpack.c.bf16 %v758_v16, %v757_v14 }
 0x606   :  { %962 = vmatmul.msk.bf16.vlgmr.msra.gmra.mxu3 %vm793_vm14, %v759_v17 }
 0x689   :  { %v806_v19 = vpop.f32.mrf.mxu3 }
 0x68a   :  { %v807_v20 = vadd.f32 %v1015_v18, %v806_v19 }
 0x68c   :  { %v811_v21 = vadd.f32 %v807_v20, %v720_v1 }
 0x68e   :  { %v813_v22 = vsel %vm104_vm0, %v811_v21, 0.0 }
 0x68f   :  { %814 = vadd.xlane.f32.xlu1 %v813_v22 }
 0x691   :  { %v808_v23 = vpop.f32.mrf.mxu3 }
 0x692   :  { %v809_v24 = vadd.f32 %v1015_v18, %v808_v23 }
 0x694   :  { %v812_v25 = vadd.f32 %v809_v24, %v721_v4 }
 0x696   :  { %v816_v26 = vsel %vm104_vm0, %v812_v25, 0.0 }
 0x697   :  { %817 = vadd.xlane.f32.xlu2 %v816_v26 }
 0x702   :  { %v815_v27 = vpop.xlane.xlu1 %814 }
 0x703   :  { %v819_v2 = vmul.f32 %v815_v27, %v1401_v28 }
 0x705   :  { %v821_v29 = vsub.f32 %v811_v21, %v819_v2 }
 0x707   :  { %v823_v30 = vmul.f32 %v821_v29, %v821_v29 }
 0x709   :  { %v825_v31 = vsel %vm104_vm0, %v823_v30, 0.0 }
 0x70a   :  { %v818_v3 = vpop.xlane.xlu2 %817  ;;  %826 = vadd.xlane.f32.xlu0 %v825_v31 }
 0x70b   :  { %v820_v32 = vmul.f32 %v818_v3, %v1401_v28 }
 0x70d   :  { %v822_v33 = vsub.f32 %v812_v25, %v820_v32 }
 0x70f   :  { %v824_v34 = vmul.f32 %v822_v33, %v822_v33 }
 0x711   :  { %v828_v35 = vsel %vm104_vm0, %v824_v34, 0.0 }
 0x712   :  { %829 = vadd.xlane.f32.xlu1 %v828_v35 }
 0x77d   :  { %v827_v36 = vpop.xlane.xlu0 %826 }
 0x77e   :  { %v831_v37 = vmul.f32 %v827_v36, %v1401_v28 }
 0x780   :  { %v833_v38 = vadd.f32 1e-05, %v831_v37 }
 0x782   :  { %1056 = vrsqrt.f32 %v833_v38  ;;  %vm841_vm1 = vweird.f32 %v833_v38 }
 0x785   :  { %v830_v39 = vpop.xlane.xlu1 %829 }
 0x786   :  { %v832_v40 = vmul.f32 %v830_v39, %v1401_v28 }
 0x788   :  { %v1057_v41 = vpop.eup %1056  ;;  %v834_v42 = vadd.f32 1e-05, %v832_v40 }
 0x789   :  { %v836_v43 = vmul.f32 %v1057_v41, %v833_v38  ;;  %vm842_vm15 = vweird.f32 %v1057_v41 }
 0x78a   :  { %1058 = vrsqrt.f32 %v834_v42  ;;  %vm843_vm2 = vmor %vm841_vm1, %vm842_vm15  ;;  %vm851_vm4 = vweird.f32 %v834_v42 }
 0x78b   :  { %v837_v44 = vmul.f32 %v1057_v41, %v836_v43 }
 0x78d   :  { %v838_v45 = vmul.f32 0.5, %v837_v44 }
 0x78f   :  { %v839_v46 = vsub.f32 1.5, %v838_v45 }
 0x790   :  { %v1059_v47 = vpop.eup %1058 }
 0x791   :  { %v840_v48 = vmul.f32 %v1057_v41, %v839_v46  ;;  %v846_v49 = vmul.f32 %v1059_v47, %v834_v42  ;;  %vm852_vm3 = vweird.f32 %v1059_v47 }
 0x792   :  { %vm853_vm5 = vmor %vm851_vm4, %vm852_vm3 }
 0x793   :  { %v844_v51 = vsel %vm843_vm2, %v1057_v41, %v840_v48  ;;  %v847_v52 = vmul.f32 %v1059_v47, %v846_v49 }
 0x794   :  { %v855_v54 = vmul.f32 %v844_v51, %v821_v29 }
 0x795   :  { %v848_v55 = vmul.f32 0.5, %v847_v52 }
 0x796   :  { %v858_v28 = vmul.f32 %v1016_v50, %v855_v54 }
 0x797   :  { %v849_v56 = vsub.f32 1.5, %v848_v55 }
 0x798   :  { %v861_v57 = vadd.f32 %v1017_v53, %v858_v28 }
 0x799   :  { %v850_v58 = vmul.f32 %v1059_v47, %v849_v56 }
 0x79a   :  { %863 = vst.msk [vmem:[#allocation8] sm:$0xff] %vm104_vm0, %v861_v57 }
 0x79b   :  { %v854_v59 = vsel %vm853_vm5, %v1059_v47, %v850_v58 }
 0x79c   :  { %v856_v60 = vmul.f32 %v854_v59, %v822_v33 }
 0x79e   :  { %v859_v61 = vmul.f32 %v1016_v50, %v856_v60 }
 0x7a0   :  { %v862_v62 = vadd.f32 %v1017_v53, %v859_v61 }
 0x7a2   :  { %864 = vst.msk [vmem:[#allocation8 + $0x8] sm:$0xff] %vm104_vm0, %v862_v62 }
 0x7a3   :  { %877 = dma.vmem_to_hbm [thread:$0]  %s870_s27, 256, %s872_s30, [#allocation4], %s1208_s0, %s1208_s0, %s1203_s16  }
 0x7a4   :  { %1184 = dma.done.wait [#allocation4], 256  }
 0x7a5   :  { %1185 = vsyncadd [#allocation4], 4294967040 }
 0x7a6   :  { %1186 = dma.done.wait [#allocation10], 1024  }
 0x7a7   :  { %1187 = vsyncadd [#allocation10], 4294966272 }
 0x7a8   :  { %899 = vsyncpa [#allocation3], 1 }
 0x7a9   :  { %900 = vsyncpa [#allocation6], 1 }
 0x7aa   :  { %901 = vsyncpa [#allocation4], 1 }
 0x7ab   :  { %902 = vsyncpa [#allocation10], 1 }

</bundles_post_ra>
